<compile_context>
chip_gen: v6e
topology: v6e:2x2x1
jax: 0.10.0
libtpu: 0.0.40
codegen_flags: <defaults>
</compile_context>

<pallas_src>
import functools

import jax
import jax.numpy as jnp
from jax.experimental import pallas as pl
from jax.experimental.pallas import tpu as pltpu

GN_EPS = 1e-5  # PyTorch GroupNorm default eps


def _round_up(x, m):
    return ((x + m - 1) // m) * m


def _mask_decoder_kernel(scale_ref, shift_ref, x_ref,
                         w1_ref, b1_ref, w2a_ref, w2g_ref, b2a_ref, b2g_ref,
                         o_ref, *, num_bands, band_out):
    """One (batch, time-tile) grid point: all bands, both branches.

    scale_ref/shift_ref : (B, K) f32 in SMEM -- per-(sample, band) GroupNorm
        rstd and -mean*rstd, precomputed in the wrapper over the FULL T axis.
    x_ref   : (K, TT, C)  f32 activations for this (b, t) tile.
    w1_ref  : (K, C, 8C)  bf16 gamma-folded, mask||residual concatenated conv1.
    b1_ref  : (K, 1, 8C)  f32  beta-folded conv1 bias.
    w2a_ref : (K, 8C, band_out) bf16 block-diagonal second conv, GLU "a" half
              (rows [0,4C) -> mask branch, rows [4C,8C) -> residual branch).
    w2g_ref : (K, 8C, band_out) bf16 same layout, GLU "gate" half.
    b2a_ref/b2g_ref : (K, 1, band_out) f32.
    o_ref   : (TT, out_pad) f32; band k owns lanes [k*band_out, (k+1)*band_out).
    """
    b = pl.program_id(0)

    # Keep the lane padding of the output tile well defined (dropped later).
    total = num_bands * band_out
    if o_ref.shape[-1] > total:
        o_ref[:, total:] = jnp.zeros(
            (o_ref.shape[0], o_ref.shape[-1] - total), o_ref.dtype)

    # Static Python loop -> every slice / store offset is static (cheap masked
    # stores, no dynamic lane indexing).  Each band's result is stored
    # immediately, so nothing stays live across bands.
    for k in range(num_bands):
        xb = x_ref[k]                                          # (TT, C) f32
        # GroupNorm apply (stats hoisted to the wrapper): one fused mul-add,
        # then bf16 cast for the MXU.  gamma/beta live inside w1/b1.
        xhat = (xb * scale_ref[b, k] + shift_ref[b, k]).astype(jnp.bfloat16)

        # Both branches' Conv1d(C, 4C, 1) as one (C, 8C) MXU matmul.
        h = jnp.tanh(
            jnp.dot(xhat, w1_ref[k], preferred_element_type=jnp.float32)
            + b1_ref[k])                                       # (TT, 8C) f32
        hb = h.astype(jnp.bfloat16)

        # Both branches' Conv1d(4C, 4*sub, 1) merged into two block-diagonal
        # (8C, band_out) matmuls -- "a" and "gate" GLU halves.
        a = jnp.dot(hb, w2a_ref[k], preferred_element_type=jnp.float32) + b2a_ref[k]
        g = jnp.dot(hb, w2g_ref[k], preferred_element_type=jnp.float32) + b2g_ref[k]

        # GLU; direct store into this band's static lane window (no concat).
        o_ref[:, k * band_out:(k + 1) * band_out] = a * jax.nn.sigmoid(g)


def prepare_decoder_params(params, subs, channels):
    """Fold GN affine into conv1, merge branches, stack bands.

    Returns a dict of 6 arrays:
      w1  (K, C, 8C)        bf16   [gamma_m*w1_m | gamma_r*w1_r]
      b1  (K, 1, 8C)        f32    [beta_m@w1_m+b1_m | beta_r@w1_r+b1_r]
      w2a (K, 8C, 4*max_sub) bf16  block-diag GLU "a" weights (mask, residual)
      w2g (K, 8C, 4*max_sub) bf16  block-diag GLU "gate" weights
      b2a/b2g (K, 1, 4*max_sub) f32
    Bands narrower than max_sub are zero-padded; their padded output lanes are
    dropped in the wrapper.
    """
    C = channels
    sub_p = max(subs)
    band_out = 4 * sub_p
    half_p = 2 * sub_p
    w1s, b1s, w2as, w2gs, b2as, b2gs = [], [], [], [], [], []
    for k, sub in enumerate(subs):
        half = 2 * sub
        w1_parts, b1_parts = [], []
        w2a = jnp.zeros((8 * C, band_out), jnp.float32)
        w2g = jnp.zeros((8 * C, band_out), jnp.float32)
        b2a = jnp.zeros((1, band_out), jnp.float32)
        b2g = jnp.zeros((1, band_out), jnp.float32)
        for bi, branch in enumerate(("mask", "residual")):
            gamma, beta, w1, b1, w2, b2 = params[branch][k]
            # xn @ w1 = xhat @ (diag(gamma) @ w1) + (beta @ w1 + b1)  (f32 fold)
            w1_parts.append(gamma.reshape(C, 1) * w1)            # (C, 4C)
            b1_parts.append(beta @ w1 + b1)                      # (1, 4C)
            r0 = bi * 4 * C          # hidden-row block of this branch
            c0 = bi * half_p         # output-lane block of this branch
            w2a = w2a.at[r0:r0 + 4 * C, c0:c0 + half].set(w2[:, :half])
            w2g = w2g.at[r0:r0 + 4 * C, c0:c0 + half].set(w2[:, half:])
            b2a = b2a.at[:, c0:c0 + half].set(b2[:, :half])
            b2g = b2g.at[:, c0:c0 + half].set(b2[:, half:])
        w1s.append(jnp.concatenate(w1_parts, axis=1))            # (C, 8C)
        b1s.append(jnp.concatenate(b1_parts, axis=1))            # (1, 8C)
        w2as.append(w2a); w2gs.append(w2g); b2as.append(b2a); b2gs.append(b2g)
    return dict(
        w1=jnp.stack(w1s).astype(jnp.bfloat16),
        b1=jnp.stack(b1s),
        w2a=jnp.stack(w2as).astype(jnp.bfloat16),
        w2g=jnp.stack(w2gs).astype(jnp.bfloat16),
        b2a=jnp.stack(b2as),
        b2g=jnp.stack(b2gs),
    )


def _run_decoder(x_bktc, gn_scale, gn_shift, wp, band_out, tt):
    B, K, T_pad, C = x_bktc.shape
    out_pad = _round_up(K * band_out, 128)   # lane-dense (padded) output width
    nt = T_pad // tt

    # Stacked weights: constant index maps -> DMA'd once, VMEM-resident.
    w_specs = [pl.BlockSpec(wp[n].shape, lambda b, t: (0, 0, 0))
               for n in ("w1", "b1", "w2a", "w2g", "b2a", "b2g")]

    kernel = functools.partial(_mask_decoder_kernel,
                               num_bands=K, band_out=band_out)

    return pl.pallas_call(
        kernel,
        out_shape=jax.ShapeDtypeStruct((B, T_pad, out_pad), jnp.float32),
        grid=(B, nt),
        in_specs=[
            pl.BlockSpec(memory_space=pltpu.MemorySpace.SMEM),   # gn_scale
            pl.BlockSpec(memory_space=pltpu.MemorySpace.SMEM),   # gn_shift
            pl.BlockSpec((None, K, tt, C), lambda b, t: (b, 0, t, 0)),
        ] + w_specs,
        out_specs=pl.BlockSpec((None, tt, out_pad), lambda b, t: (b, t, 0)),
        compiler_params=pltpu.CompilerParams(
            dimension_semantics=("parallel", "parallel"),
            # Above the v5e (16 MiB) / v6e (32 MiB) scoped defaults, safely
            # below v7x's 64 MiB physical VMEM.  Re-sweep per generation.
            vmem_limit_bytes=40 * 1024 * 1024),
    )(gn_scale, gn_shift, x_bktc,
      wp["w1"], wp["b1"], wp["w2a"], wp["w2g"], wp["b2a"], wp["b2g"])


def mask_decoder_forward(x, params, subbands, freq_dim, channels):
    """Matches MaskDecoder.forward.

    x: (B, N, T, K) float32 (N == channels, K == number of subbands present).
    Returns m, r of shape (B, T, freq_dim, 2).
    """
    B, N, T, K_in = x.shape
    assert N == channels
    # Matches PyTorch: process min(len(subbands), K) bands, zero-pad to freq_dim.
    n_bands = min(len(subbands), K_in)
    subs = tuple(int(s) for s in subbands[:n_bands])
    K = n_bands
    sub_p = max(subs)
    band_out = 4 * sub_p

    xk = x[:, :, :, :K]                                   # (B, C, T, K)

    # GroupNorm(1, C) stats per (sample, band) over the full (C, T) plane,
    # hoisted out of the kernel (keeps T-tiling exact; removes per-band
    # cross-lane reductions from the kernel critical path).
    mean = jnp.mean(xk, axis=(1, 2))                      # (B, K)
    var = jnp.var(xk, axis=(1, 2))                        # biased, like PyTorch
    rstd = jax.lax.rsqrt(var + GN_EPS)
    gn_scale = rstd.astype(jnp.float32)
    gn_shift = (-mean * rstd).astype(jnp.float32)

    # Single wrapper transpose: (B, C, T, K) -> (B, K, T, C)
    # (time on sublanes, channels on lanes).
    x_bktc = jnp.transpose(xk, (0, 3, 2, 1))

    # Time tiling: multiple of 16 (bf16 sublane packing), capped at 256 rows.
    tt = min(256, _round_up(T, 16))
    T_pad = _round_up(T, tt)
    if T_pad != T:
        x_bktc = jnp.pad(x_bktc, ((0, 0), (0, 0), (0, T_pad - T), (0, 0)))

    wp = prepare_decoder_params(params, subs, channels)
    out = _run_decoder(x_bktc, gn_scale, gn_shift, wp, band_out, tt)

    # Unpack the lane-padded per-band windows -> (B, T, fp, 2) mask / residual.
    m_parts, r_parts = [], []
    for k, sub in enumerate(subs):
        base = k * band_out
        m_parts.append(out[:, :T, base:base + 2 * sub])
        r_parts.append(out[:, :T, base + 2 * sub_p:base + 2 * sub_p + 2 * sub])
    fp = sum(subs)
    m = jnp.concatenate(m_parts, axis=-1).reshape(B, T, fp, 2)
    r = jnp.concatenate(r_parts, axis=-1).reshape(B, T, fp, 2)
    pad_f = freq_dim - fp
    if pad_f > 0:
        m = jnp.pad(m, ((0, 0), (0, 0), (0, pad_f), (0, 0)))
        r = jnp.pad(r, ((0, 0), (0, 0), (0, pad_f), (0, 0)))
    return m, r


def init_band_params(key, channels, sub):
    C = channels
    ks = jax.random.split(key, 6)
    gamma = 1.0 + 0.1 * jax.random.normal(ks[0], (1, C), jnp.float32)
    beta = 0.1 * jax.random.normal(ks[1], (1, C), jnp.float32)
    w1 = 0.1 * jax.random.normal(ks[2], (C, 4 * C), jnp.float32)
    b1 = 0.1 * jax.random.normal(ks[3], (1, 4 * C), jnp.float32)
    w2 = 0.1 * jax.random.normal(ks[4], (4 * C, 4 * sub), jnp.float32)
    b2 = 0.1 * jax.random.normal(ks[5], (1, 4 * sub), jnp.float32)
    return (gamma, beta, w1, b1, w2, b2)


def init_mask_decoder_params(key, subbands, channels):
    params = {"mask": [], "residual": []}
    for branch_idx, branch in enumerate(("mask", "residual")):
        for i, sub in enumerate(subbands):
            k = jax.random.fold_in(jax.random.fold_in(key, branch_idx), i)
            params[branch].append(init_band_params(k, channels, sub))
    return params


def _ref_band(x_btc, params):
    """Pure-JAX f32 reference for one band MLP (unfused weights)."""
    gamma, beta, w1, b1, w2, b2 = params
    mean = jnp.mean(x_btc, axis=(1, 2), keepdims=True)
    var = jnp.mean(jnp.square(x_btc - mean), axis=(1, 2), keepdims=True)
    xn = (x_btc - mean) * jax.lax.rsqrt(var + GN_EPS) * gamma + beta
    h = jnp.tanh(jnp.einsum("btc,cd->btd", xn, w1) + b1)
    y = jnp.einsum("btd,de->bte", h, w2) + b2
    half = y.shape[-1] // 2
    return y[..., :half] * jax.nn.sigmoid(y[..., half:])


if __name__ == "__main__":
    # Small synthetic config consistent with the module:
    # channels=32, subbands=(4, 4, 8) -> freq_dim=16, B=2, T=8, K=len(subbands)
    B, channels, T = 2, 32, 8
    subbands = (4, 4, 8)
    freq_dim = sum(subbands)
    K = len(subbands)

    key = jax.random.PRNGKey(0)
    kx, kp = jax.random.split(key)
    x = jax.random.normal(kx, (B, channels, T, K), jnp.float32)
    params = init_mask_decoder_params(kp, subbands, channels)

    m, r = mask_decoder_forward(x, params, subbands, freq_dim, channels)
    m, r = jax.block_until_ready((m, r))

    assert m.shape == (B, T, freq_dim, 2), m.shape
    assert r.shape == (B, T, freq_dim, 2), r.shape

    # Correctness check against a pure-JAX f32 reference (kernel uses bf16
    # MXU operands with f32 accumulation -> 2e-2 tolerance).
    m_ref_parts, r_ref_parts = [], []
    for i, sub in enumerate(subbands):
        x_band = jnp.transpose(x[:, :, :, i], (0, 2, 1))
        m_ref_parts.append(
            _ref_band(x_band, params["mask"][i]).reshape(B, T, sub, 2))
        r_ref_parts.append(
            _ref_band(x_band, params["residual"][i]).reshape(B, T, sub, 2))
    m_ref = jnp.concatenate(m_ref_parts, axis=2)
    r_ref = jnp.concatenate(r_ref_parts, axis=2)
    assert jnp.allclose(m, m_ref, atol=2e-2, rtol=2e-2), "mask mismatch"
    assert jnp.allclose(r, r_ref, atol=2e-2, rtol=2e-2), "residual mismatch"

    print("KERNEL_OK")
</pallas_src>

<mosaic_0001>
module attributes {stable_mosaic.version = 11 : i64} {
  func.func @_mask_decoder_kernel(%arg0: i32, %arg1: i32, %arg2: memref<2x3xf32, #tpu.memory_space<smem>>, %arg3: memref<2x3xf32, #tpu.memory_space<smem>>, %arg4: memref<1x3x16x32xf32, #tpu.memory_space<vmem>>, %arg5: memref<3x32x256xbf16, #tpu.memory_space<vmem>>, %arg6: memref<3x1x256xf32, #tpu.memory_space<vmem>>, %arg7: memref<3x256x32xbf16, #tpu.memory_space<vmem>>, %arg8: memref<3x256x32xbf16, #tpu.memory_space<vmem>>, %arg9: memref<3x1x32xf32, #tpu.memory_space<vmem>>, %arg10: memref<3x1x32xf32, #tpu.memory_space<vmem>>, %arg11: memref<1x16x128xf32, #tpu.memory_space<vmem>>) attributes {dimension_semantics = [#tpu.dimension_semantics<parallel>, #tpu.dimension_semantics<parallel>], iteration_bounds = array<i64: 2, 1>, scalar_prefetch = 0 : i64, scratch_operands = 0 : i64, tpu.core_type = #tpu.core_type<tc>, window_params = [{transform_indices = @transform_0, window_bounds = array<i64: 2, 3>}, {transform_indices = @transform_1, window_bounds = array<i64: 2, 3>}, {transform_indices = @transform_2, window_bounds = array<i64: 1, 3, 16, 32>}, {pipeline_mode = #tpu.pipeline_mode<synchronous>, transform_indices = @transform_3, window_bounds = array<i64: 3, 32, 256>}, {pipeline_mode = #tpu.pipeline_mode<synchronous>, transform_indices = @transform_4, window_bounds = array<i64: 3, 1, 256>}, {pipeline_mode = #tpu.pipeline_mode<synchronous>, transform_indices = @transform_5, window_bounds = array<i64: 3, 256, 32>}, {pipeline_mode = #tpu.pipeline_mode<synchronous>, transform_indices = @transform_6, window_bounds = array<i64: 3, 256, 32>}, {pipeline_mode = #tpu.pipeline_mode<synchronous>, transform_indices = @transform_7, window_bounds = array<i64: 3, 1, 32>}, {pipeline_mode = #tpu.pipeline_mode<synchronous>, transform_indices = @transform_8, window_bounds = array<i64: 3, 1, 32>}, {transform_indices = @transform_9, window_bounds = array<i64: 1, 16, 128>}]} {
    %cst = arith.constant 0.000000e+00 : f32
    %0 = vector.broadcast %cst : f32 to vector<16x32xf32>
    %c0 = arith.constant 0 : index
    %c0_0 = arith.constant 0 : index
    %c96 = arith.constant 96 : index
    %1 = vector.load %arg11[%c0, %c0_0, %c96] : memref<1x16x128xf32, #tpu.memory_space<vmem>>, vector<1x16x32xf32>
    %2 = vector.shape_cast %1 : vector<1x16x32xf32> to vector<16x32xf32>
    %3 = vector.shape_cast %0 : vector<16x32xf32> to vector<1x16x32xf32>
    tpu.vector_store %arg11[%c0, %c0_0, %c96], %3 {strides = array<i32>} : memref<1x16x128xf32, #tpu.memory_space<vmem>>, vector<1x16x32xf32>,
    %c0_1 = arith.constant 0 : index
    %c0_2 = arith.constant 0 : index
    %c0_3 = arith.constant 0 : index
    %c0_4 = arith.constant 0 : index
    %4 = vector.load %arg4[%c0_1, %c0_2, %c0_3, %c0_4] : memref<1x3x16x32xf32, #tpu.memory_space<vmem>>, vector<1x1x16x32xf32>
    %5 = vector.shape_cast %4 : vector<1x1x16x32xf32> to vector<16x32xf32>
    %6 = arith.index_cast %arg0 : i32 to index
    %c0_5 = arith.constant 0 : index
    %7 = memref.load %arg2[%6, %c0_5] : memref<2x3xf32, #tpu.memory_space<smem>>
    %8 = vector.broadcast %7 : f32 to vector<16x32xf32>
    %9 = arith.mulf %5, %8 : vector<16x32xf32>
    %10 = arith.index_cast %arg0 : i32 to index
    %c0_6 = arith.constant 0 : index
    %11 = memref.load %arg3[%10, %c0_6] : memref<2x3xf32, #tpu.memory_space<smem>>
    %12 = vector.broadcast %11 : f32 to vector<16x32xf32>
    %13 = arith.addf %9, %12 : vector<16x32xf32>
    %14 = arith.truncf %13 : vector<16x32xf32> to vector<16x32xbf16>
    %c0_7 = arith.constant 0 : index
    %c0_8 = arith.constant 0 : index
    %c0_9 = arith.constant 0 : index
    %15 = vector.load %arg5[%c0_7, %c0_8, %c0_9] : memref<3x32x256xbf16, #tpu.memory_space<vmem>>, vector<1x32x256xbf16>
    %16 = vector.shape_cast %15 : vector<1x32x256xbf16> to vector<32x256xbf16>
    %cst_10 = arith.constant dense<0.000000e+00> : vector<16x256xf32>
    %17 = tpu.matmul %14, %16, %cst_10 {dimension_numbers = #tpu.dot_dimension_numbers<[1], [0], [0], [1], [0, 0, 1, 1], [], []>} : vector<16x32xbf16>, vector<32x256xbf16>, vector<16x256xf32> -> vector<16x256xf32>
    %c0_11 = arith.constant 0 : index
    %c0_12 = arith.constant 0 : index
    %c0_13 = arith.constant 0 : index
    %18 = vector.load %arg6[%c0_11, %c0_12, %c0_13] : memref<3x1x256xf32, #tpu.memory_space<vmem>>, vector<1x1x256xf32>
    %19 = vector.shape_cast %18 : vector<1x1x256xf32> to vector<1x256xf32>
    %20 = vector.broadcast %19 : vector<1x256xf32> to vector<16x256xf32>
    %21 = arith.addf %17, %20 : vector<16x256xf32>
    %22 = math.tanh %21 : vector<16x256xf32>
    %23 = arith.truncf %22 : vector<16x256xf32> to vector<16x256xbf16>
    %c0_14 = arith.constant 0 : index
    %c0_15 = arith.constant 0 : index
    %c0_16 = arith.constant 0 : index
    %24 = vector.load %arg7[%c0_14, %c0_15, %c0_16] : memref<3x256x32xbf16, #tpu.memory_space<vmem>>, vector<1x256x32xbf16>
    %25 = vector.shape_cast %24 : vector<1x256x32xbf16> to vector<256x32xbf16>
    %cst_17 = arith.constant dense<0.000000e+00> : vector<16x32xf32>
    %26 = tpu.matmul %23, %25, %cst_17 {dimension_numbers = #tpu.dot_dimension_numbers<[1], [0], [0], [1], [0, 0, 1, 1], [], []>} : vector<16x256xbf16>, vector<256x32xbf16>, vector<16x32xf32> -> vector<16x32xf32>
    %c0_18 = arith.constant 0 : index
    %c0_19 = arith.constant 0 : index
    %c0_20 = arith.constant 0 : index
    %27 = vector.load %arg9[%c0_18, %c0_19, %c0_20] : memref<3x1x32xf32, #tpu.memory_space<vmem>>, vector<1x1x32xf32>
    %28 = vector.shape_cast %27 : vector<1x1x32xf32> to vector<1x32xf32>
    %29 = vector.broadcast %28 : vector<1x32xf32> to vector<16x32xf32>
    %30 = arith.addf %26, %29 : vector<16x32xf32>
    %c0_21 = arith.constant 0 : index
    %c0_22 = arith.constant 0 : index
    %c0_23 = arith.constant 0 : index
    %31 = vector.load %arg8[%c0_21, %c0_22, %c0_23] : memref<3x256x32xbf16, #tpu.memory_space<vmem>>, vector<1x256x32xbf16>
    %32 = vector.shape_cast %31 : vector<1x256x32xbf16> to vector<256x32xbf16>
    %cst_24 = arith.constant dense<0.000000e+00> : vector<16x32xf32>
    %33 = tpu.matmul %23, %32, %cst_24 {dimension_numbers = #tpu.dot_dimension_numbers<[1], [0], [0], [1], [0, 0, 1, 1], [], []>} : vector<16x256xbf16>, vector<256x32xbf16>, vector<16x32xf32> -> vector<16x32xf32>
    %c0_25 = arith.constant 0 : index
    %c0_26 = arith.constant 0 : index
    %c0_27 = arith.constant 0 : index
    %34 = vector.load %arg10[%c0_25, %c0_26, %c0_27] : memref<3x1x32xf32, #tpu.memory_space<vmem>>, vector<1x1x32xf32>
    %35 = vector.shape_cast %34 : vector<1x1x32xf32> to vector<1x32xf32>
    %36 = vector.broadcast %35 : vector<1x32xf32> to vector<16x32xf32>
    %37 = arith.addf %33, %36 : vector<16x32xf32>
    %38 = arith.negf %37 : vector<16x32xf32>
    %39 = math.exp %38 : vector<16x32xf32>
    %cst_28 = arith.constant 1.000000e+00 : f32
    %40 = vector.broadcast %cst_28 : f32 to vector<16x32xf32>
    %41 = arith.addf %40, %39 : vector<16x32xf32>
    %42 = arith.divf %40, %41 : vector<16x32xf32>
    %43 = arith.mulf %30, %42 : vector<16x32xf32>
    %c0_29 = arith.constant 0 : index
    %c0_30 = arith.constant 0 : index
    %c0_31 = arith.constant 0 : index
    %44 = vector.load %arg11[%c0_29, %c0_30, %c0_31] : memref<1x16x128xf32, #tpu.memory_space<vmem>>, vector<1x16x32xf32>
    %45 = vector.shape_cast %44 : vector<1x16x32xf32> to vector<16x32xf32>
    %46 = vector.shape_cast %43 : vector<16x32xf32> to vector<1x16x32xf32>
    tpu.vector_store %arg11[%c0_29, %c0_30, %c0_31], %46 {strides = array<i32>} : memref<1x16x128xf32, #tpu.memory_space<vmem>>, vector<1x16x32xf32>,
    %c0_32 = arith.constant 0 : index
    %c1 = arith.constant 1 : index
    %c0_33 = arith.constant 0 : index
    %c0_34 = arith.constant 0 : index
    %47 = vector.load %arg4[%c0_32, %c1, %c0_33, %c0_34] : memref<1x3x16x32xf32, #tpu.memory_space<vmem>>, vector<1x1x16x32xf32>
    %48 = vector.shape_cast %47 : vector<1x1x16x32xf32> to vector<16x32xf32>
    %49 = arith.index_cast %arg0 : i32 to index
    %c1_35 = arith.constant 1 : index
    %50 = memref.load %arg2[%49, %c1_35] : memref<2x3xf32, #tpu.memory_space<smem>>
    %51 = vector.broadcast %50 : f32 to vector<16x32xf32>
    %52 = arith.mulf %48, %51 : vector<16x32xf32>
    %53 = arith.index_cast %arg0 : i32 to index
    %c1_36 = arith.constant 1 : index
    %54 = memref.load %arg3[%53, %c1_36] : memref<2x3xf32, #tpu.memory_space<smem>>
    %55 = vector.broadcast %54 : f32 to vector<16x32xf32>
    %56 = arith.addf %52, %55 : vector<16x32xf32>
    %57 = arith.truncf %56 : vector<16x32xf32> to vector<16x32xbf16>
    %c1_37 = arith.constant 1 : index
    %c0_38 = arith.constant 0 : index
    %c0_39 = arith.constant 0 : index
    %58 = vector.load %arg5[%c1_37, %c0_38, %c0_39] : memref<3x32x256xbf16, #tpu.memory_space<vmem>>, vector<1x32x256xbf16>
    %59 = vector.shape_cast %58 : vector<1x32x256xbf16> to vector<32x256xbf16>
    %cst_40 = arith.constant dense<0.000000e+00> : vector<16x256xf32>
    %60 = tpu.matmul %57, %59, %cst_40 {dimension_numbers = #tpu.dot_dimension_numbers<[1], [0], [0], [1], [0, 0, 1, 1], [], []>} : vector<16x32xbf16>, vector<32x256xbf16>, vector<16x256xf32> -> vector<16x256xf32>
    %c1_41 = arith.constant 1 : index
    %c0_42 = arith.constant 0 : index
    %c0_43 = arith.constant 0 : index
    %61 = vector.load %arg6[%c1_41, %c0_42, %c0_43] : memref<3x1x256xf32, #tpu.memory_space<vmem>>, vector<1x1x256xf32>
    %62 = vector.shape_cast %61 : vector<1x1x256xf32> to vector<1x256xf32>
    %63 = vector.broadcast %62 : vector<1x256xf32> to vector<16x256xf32>
    %64 = arith.addf %60, %63 : vector<16x256xf32>
    %65 = math.tanh %64 : vector<16x256xf32>
    %66 = arith.truncf %65 : vector<16x256xf32> to vector<16x256xbf16>
    %c1_44 = arith.constant 1 : index
    %c0_45 = arith.constant 0 : index
    %c0_46 = arith.constant 0 : index
    %67 = vector.load %arg7[%c1_44, %c0_45, %c0_46] : memref<3x256x32xbf16, #tpu.memory_space<vmem>>, vector<1x256x32xbf16>
    %68 = vector.shape_cast %67 : vector<1x256x32xbf16> to vector<256x32xbf16>
    %cst_47 = arith.constant dense<0.000000e+00> : vector<16x32xf32>
    %69 = tpu.matmul %66, %68, %cst_47 {dimension_numbers = #tpu.dot_dimension_numbers<[1], [0], [0], [1], [0, 0, 1, 1], [], []>} : vector<16x256xbf16>, vector<256x32xbf16>, vector<16x32xf32> -> vector<16x32xf32>
    %c1_48 = arith.constant 1 : index
    %c0_49 = arith.constant 0 : index
    %c0_50 = arith.constant 0 : index
    %70 = vector.load %arg9[%c1_48, %c0_49, %c0_50] : memref<3x1x32xf32, #tpu.memory_space<vmem>>, vector<1x1x32xf32>
    %71 = vector.shape_cast %70 : vector<1x1x32xf32> to vector<1x32xf32>
    %72 = vector.broadcast %71 : vector<1x32xf32> to vector<16x32xf32>
    %73 = arith.addf %69, %72 : vector<16x32xf32>
    %c1_51 = arith.constant 1 : index
    %c0_52 = arith.constant 0 : index
    %c0_53 = arith.constant 0 : index
    %74 = vector.load %arg8[%c1_51, %c0_52, %c0_53] : memref<3x256x32xbf16, #tpu.memory_space<vmem>>, vector<1x256x32xbf16>
    %75 = vector.shape_cast %74 : vector<1x256x32xbf16> to vector<256x32xbf16>
    %cst_54 = arith.constant dense<0.000000e+00> : vector<16x32xf32>
    %76 = tpu.matmul %66, %75, %cst_54 {dimension_numbers = #tpu.dot_dimension_numbers<[1], [0], [0], [1], [0, 0, 1, 1], [], []>} : vector<16x256xbf16>, vector<256x32xbf16>, vector<16x32xf32> -> vector<16x32xf32>
    %c1_55 = arith.constant 1 : index
    %c0_56 = arith.constant 0 : index
    %c0_57 = arith.constant 0 : index
    %77 = vector.load %arg10[%c1_55, %c0_56, %c0_57] : memref<3x1x32xf32, #tpu.memory_space<vmem>>, vector<1x1x32xf32>
    %78 = vector.shape_cast %77 : vector<1x1x32xf32> to vector<1x32xf32>
    %79 = vector.broadcast %78 : vector<1x32xf32> to vector<16x32xf32>
    %80 = arith.addf %76, %79 : vector<16x32xf32>
    %81 = arith.negf %80 : vector<16x32xf32>
    %82 = math.exp %81 : vector<16x32xf32>
    %cst_58 = arith.constant 1.000000e+00 : f32
    %83 = vector.broadcast %cst_58 : f32 to vector<16x32xf32>
    %84 = arith.addf %83, %82 : vector<16x32xf32>
    %85 = arith.divf %83, %84 : vector<16x32xf32>
    %86 = arith.mulf %73, %85 : vector<16x32xf32>
    %c0_59 = arith.constant 0 : index
    %c0_60 = arith.constant 0 : index
    %c32 = arith.constant 32 : index
    %87 = vector.load %arg11[%c0_59, %c0_60, %c32] : memref<1x16x128xf32, #tpu.memory_space<vmem>>, vector<1x16x32xf32>
    %88 = vector.shape_cast %87 : vector<1x16x32xf32> to vector<16x32xf32>
    %89 = vector.shape_cast %86 : vector<16x32xf32> to vector<1x16x32xf32>
    tpu.vector_store %arg11[%c0_59, %c0_60, %c32], %89 {strides = array<i32>} : memref<1x16x128xf32, #tpu.memory_space<vmem>>, vector<1x16x32xf32>,
    %c0_61 = arith.constant 0 : index
    %c2 = arith.constant 2 : index
    %c0_62 = arith.constant 0 : index
    %c0_63 = arith.constant 0 : index
    %90 = vector.load %arg4[%c0_61, %c2, %c0_62, %c0_63] : memref<1x3x16x32xf32, #tpu.memory_space<vmem>>, vector<1x1x16x32xf32>
    %91 = vector.shape_cast %90 : vector<1x1x16x32xf32> to vector<16x32xf32>
    %92 = arith.index_cast %arg0 : i32 to index
    %c2_64 = arith.constant 2 : index
    %93 = memref.load %arg2[%92, %c2_64] : memref<2x3xf32, #tpu.memory_space<smem>>
    %94 = vector.broadcast %93 : f32 to vector<16x32xf32>
    %95 = arith.mulf %91, %94 : vector<16x32xf32>
    %96 = arith.index_cast %arg0 : i32 to index
    %c2_65 = arith.constant 2 : index
    %97 = memref.load %arg3[%96, %c2_65] : memref<2x3xf32, #tpu.memory_space<smem>>
    %98 = vector.broadcast %97 : f32 to vector<16x32xf32>
    %99 = arith.addf %95, %98 : vector<16x32xf32>
    %100 = arith.truncf %99 : vector<16x32xf32> to vector<16x32xbf16>
    %c2_66 = arith.constant 2 : index
    %c0_67 = arith.constant 0 : index
    %c0_68 = arith.constant 0 : index
    %101 = vector.load %arg5[%c2_66, %c0_67, %c0_68] : memref<3x32x256xbf16, #tpu.memory_space<vmem>>, vector<1x32x256xbf16>
    %102 = vector.shape_cast %101 : vector<1x32x256xbf16> to vector<32x256xbf16>
    %cst_69 = arith.constant dense<0.000000e+00> : vector<16x256xf32>
    %103 = tpu.matmul %100, %102, %cst_69 {dimension_numbers = #tpu.dot_dimension_numbers<[1], [0], [0], [1], [0, 0, 1, 1], [], []>} : vector<16x32xbf16>, vector<32x256xbf16>, vector<16x256xf32> -> vector<16x256xf32>
    %c2_70 = arith.constant 2 : index
    %c0_71 = arith.constant 0 : index
    %c0_72 = arith.constant 0 : index
    %104 = vector.load %arg6[%c2_70, %c0_71, %c0_72] : memref<3x1x256xf32, #tpu.memory_space<vmem>>, vector<1x1x256xf32>
    %105 = vector.shape_cast %104 : vector<1x1x256xf32> to vector<1x256xf32>
    %106 = vector.broadcast %105 : vector<1x256xf32> to vector<16x256xf32>
    %107 = arith.addf %103, %106 : vector<16x256xf32>
    %108 = math.tanh %107 : vector<16x256xf32>
    %109 = arith.truncf %108 : vector<16x256xf32> to vector<16x256xbf16>
    %c2_73 = arith.constant 2 : index
    %c0_74 = arith.constant 0 : index
    %c0_75 = arith.constant 0 : index
    %110 = vector.load %arg7[%c2_73, %c0_74, %c0_75] : memref<3x256x32xbf16, #tpu.memory_space<vmem>>, vector<1x256x32xbf16>
    %111 = vector.shape_cast %110 : vector<1x256x32xbf16> to vector<256x32xbf16>
    %cst_76 = arith.constant dense<0.000000e+00> : vector<16x32xf32>
    %112 = tpu.matmul %109, %111, %cst_76 {dimension_numbers = #tpu.dot_dimension_numbers<[1], [0], [0], [1], [0, 0, 1, 1], [], []>} : vector<16x256xbf16>, vector<256x32xbf16>, vector<16x32xf32> -> vector<16x32xf32>
    %c2_77 = arith.constant 2 : index
    %c0_78 = arith.constant 0 : index
    %c0_79 = arith.constant 0 : index
    %113 = vector.load %arg9[%c2_77, %c0_78, %c0_79] : memref<3x1x32xf32, #tpu.memory_space<vmem>>, vector<1x1x32xf32>
    %114 = vector.shape_cast %113 : vector<1x1x32xf32> to vector<1x32xf32>
    %115 = vector.broadcast %114 : vector<1x32xf32> to vector<16x32xf32>
    %116 = arith.addf %112, %115 : vector<16x32xf32>
    %c2_80 = arith.constant 2 : index
    %c0_81 = arith.constant 0 : index
    %c0_82 = arith.constant 0 : index
    %117 = vector.load %arg8[%c2_80, %c0_81, %c0_82] : memref<3x256x32xbf16, #tpu.memory_space<vmem>>, vector<1x256x32xbf16>
    %118 = vector.shape_cast %117 : vector<1x256x32xbf16> to vector<256x32xbf16>
    %cst_83 = arith.constant dense<0.000000e+00> : vector<16x32xf32>
    %119 = tpu.matmul %109, %118, %cst_83 {dimension_numbers = #tpu.dot_dimension_numbers<[1], [0], [0], [1], [0, 0, 1, 1], [], []>} : vector<16x256xbf16>, vector<256x32xbf16>, vector<16x32xf32> -> vector<16x32xf32>
    %c2_84 = arith.constant 2 : index
    %c0_85 = arith.constant 0 : index
    %c0_86 = arith.constant 0 : index
    %120 = vector.load %arg10[%c2_84, %c0_85, %c0_86] : memref<3x1x32xf32, #tpu.memory_space<vmem>>, vector<1x1x32xf32>
    %121 = vector.shape_cast %120 : vector<1x1x32xf32> to vector<1x32xf32>
    %122 = vector.broadcast %121 : vector<1x32xf32> to vector<16x32xf32>
    %123 = arith.addf %119, %122 : vector<16x32xf32>
    %124 = arith.negf %123 : vector<16x32xf32>
    %125 = math.exp %124 : vector<16x32xf32>
    %cst_87 = arith.constant 1.000000e+00 : f32
    %126 = vector.broadcast %cst_87 : f32 to vector<16x32xf32>
    %127 = arith.addf %126, %125 : vector<16x32xf32>
    %128 = arith.divf %126, %127 : vector<16x32xf32>
    %129 = arith.mulf %116, %128 : vector<16x32xf32>
    %c0_88 = arith.constant 0 : index
    %c0_89 = arith.constant 0 : index
    %c64 = arith.constant 64 : index
    %130 = vector.load %arg11[%c0_88, %c0_89, %c64] : memref<1x16x128xf32, #tpu.memory_space<vmem>>, vector<1x16x32xf32>
    %131 = vector.shape_cast %130 : vector<1x16x32xf32> to vector<16x32xf32>
    %132 = vector.shape_cast %129 : vector<16x32xf32> to vector<1x16x32xf32>
    tpu.vector_store %arg11[%c0_88, %c0_89, %c64], %132 {strides = array<i32>} : memref<1x16x128xf32, #tpu.memory_space<vmem>>, vector<1x16x32xf32>,
    return
  }
  func.func @transform_0(%arg0: i32, %arg1: i32) -> (i32, i32) {
    %c0_i32 = arith.constant 0 : i32
    %c0_i32_0 = arith.constant 0 : i32
    %c0_i32_1 = arith.constant 0 : i32
    return %c0_i32, %c0_i32_0 : i32, i32
  }
  func.func @transform_1(%arg0: i32, %arg1: i32) -> (i32, i32) {
    %c0_i32 = arith.constant 0 : i32
    %c0_i32_0 = arith.constant 0 : i32
    %c0_i32_1 = arith.constant 0 : i32
    return %c0_i32, %c0_i32_0 : i32, i32
  }
  func.func @transform_2(%arg0: i32, %arg1: i32) -> (i32, i32, i32, i32) {
    %c0_i32 = arith.constant 0 : i32
    %c0_i32_0 = arith.constant 0 : i32
    %c0_i32_1 = arith.constant 0 : i32
    return %arg0, %c0_i32, %arg1, %c0_i32_0 : i32, i32, i32, i32
  }
  func.func @transform_3(%arg0: i32, %arg1: i32) -> (i32, i32, i32) {
    %c0_i32 = arith.constant 0 : i32
    %c0_i32_0 = arith.constant 0 : i32
    %c0_i32_1 = arith.constant 0 : i32
    %c0_i32_2 = arith.constant 0 : i32
    return %c0_i32, %c0_i32_0, %c0_i32_1 : i32, i32, i32
  }
  func.func @transform_4(%arg0: i32, %arg1: i32) -> (i32, i32, i32) {
    %c0_i32 = arith.constant 0 : i32
    %c0_i32_0 = arith.constant 0 : i32
    %c0_i32_1 = arith.constant 0 : i32
    %c0_i32_2 = arith.constant 0 : i32
    return %c0_i32, %c0_i32_0, %c0_i32_1 : i32, i32, i32
  }
  func.func @transform_5(%arg0: i32, %arg1: i32) -> (i32, i32, i32) {
    %c0_i32 = arith.constant 0 : i32
    %c0_i32_0 = arith.constant 0 : i32
    %c0_i32_1 = arith.constant 0 : i32
    %c0_i32_2 = arith.constant 0 : i32
    return %c0_i32, %c0_i32_0, %c0_i32_1 : i32, i32, i32
  }
  func.func @transform_6(%arg0: i32, %arg1: i32) -> (i32, i32, i32) {
    %c0_i32 = arith.constant 0 : i32
    %c0_i32_0 = arith.constant 0 : i32
    %c0_i32_1 = arith.constant 0 : i32
    %c0_i32_2 = arith.constant 0 : i32
    return %c0_i32, %c0_i32_0, %c0_i32_1 : i32, i32, i32
  }
  func.func @transform_7(%arg0: i32, %arg1: i32) -> (i32, i32, i32) {
    %c0_i32 = arith.constant 0 : i32
    %c0_i32_0 = arith.constant 0 : i32
    %c0_i32_1 = arith.constant 0 : i32
    %c0_i32_2 = arith.constant 0 : i32
    return %c0_i32, %c0_i32_0, %c0_i32_1 : i32, i32, i32
  }
  func.func @transform_8(%arg0: i32, %arg1: i32) -> (i32, i32, i32) {
    %c0_i32 = arith.constant 0 : i32
    %c0_i32_0 = arith.constant 0 : i32
    %c0_i32_1 = arith.constant 0 : i32
    %c0_i32_2 = arith.constant 0 : i32
    return %c0_i32, %c0_i32_0, %c0_i32_1 : i32, i32, i32
  }
  func.func @transform_9(%arg0: i32, %arg1: i32) -> (i32, i32, i32) {
    %c0_i32 = arith.constant 0 : i32
    %c0_i32_0 = arith.constant 0 : i32
    return %arg0, %arg1, %c0_i32 : i32, i32, i32
  }
}

</mosaic_0001>

<bundles_post_ra>
// kernel: tpu_custom_call.1
= control target key start
LH: loop header
LB: loop body
LE: loop exit
PB: predicated region body
PF: predicated region fallthrough
CT: control target
= control target key end

     0   :  { %s3337_s0 = inlined_call_operand.vmem [shape: f32[2,3], index: 0, kind: input, shape index: {}]   ;;  %s3338_s1 = inlined_call_operand.vmem [shape: f32[2,3], index: 1, kind: input, shape index: {}]   ;;  %s3339_s2 = inlined_call_operand.vmem [shape: f32[2,3,16,32], index: 2, kind: input, shape index: {}]   ;;  %s3340_s3 = inlined_call_operand.vmem [shape: bf16[3,32,256], index: 3, kind: input, shape index: {}]   ;;  %s3341_s4 = inlined_call_operand.vmem [shape: f32[3,1,256], index: 4, kind: input, shape index: {}]   ;;  %s3342_s5 = inlined_call_operand.vmem [shape: bf16[3,256,32], index: 5, kind: input, shape index: {}]   ;;  %s3343_s6 = inlined_call_operand.vmem [shape: bf16[3,256,32], index: 6, kind: input, shape index: {}]   ;;  %s3344_s7 = inlined_call_operand.vmem [shape: f32[3,1,32], index: 7, kind: input, shape index: {}]   ;;  %s3345_s8 = inlined_call_operand.vmem [shape: f32[3,1,32], index: 8, kind: input, shape index: {}]   ;;  %s3346_s9 = inlined_call_operand.hbm [shape: f32[2,16,128], index: 9, kind: output, shape index: {}]  }
   0x1   :  { %3351 = sst [smem:[#allocation11_spill]] %s3337_s0 }
   0x2   :  { %3352 = sst [smem:[#allocation12_spill]] %s3338_s1 }
   0x3   :  { %14 = vsyncpa [#allocation4], 0 }
   0x4   :  { %15 = vsyncpa [#allocation6], 0 }
   0x5   :  { %16 = vsyncpa [#allocation3], 0 }
   0x6   :  { %18 = vsyncpa [#allocation3 + $0x1], 0  ;;  %s2786_s30 = smov 0   ;;  %s2788_s10 = smov 0  }
   0x7   :  { %s2790_s11 = smov 0   ;;  %s2792_s12 = smov 0  }
   0x8   :  { %s2794_s13 = smov 0   ;;  %s2796_s14 = smov 0  }
   0x9 LB: > { %s1947_s15 = sadd.s32 4294967295, %s2725_s14   ;;  %s1948_s16 = sadd.s32 4294967294, %s2725_s14   ;;  %s2725_s14 = sphi %s2796_s14, %s24_s14   ;;  %s2721_s13 = sphi %s2794_s13, %s3368_s13   ;;  %s2717_s12 = sphi %s2792_s12, %s3367_s12   ;;  %s2713_s11 = sphi %s2790_s11, %s3366_s11   ;;  %s2709_s10 = sphi %s2788_s10, %s3365_s10   ;;  %s2705_s30 = sphi %s2786_s30, %s3364_s30  }
   0xa   : > { %s36_s17 = sadd.s32 1, %s2721_s13  ;;  %s241_s18 = sadd.s32 1, %s2713_s11 }
   0xb   : > { %p38_p0 = scmp.ge.s32.totalorder %s36_s17, 2  ;;  %p251_p1 = scmp.ne.s32.totalorder %s2713_s11, %s2709_s10 }
   0xc   : > { %p252_p2 = scmp.eq.s32.totalorder %s1947_s15, 1  ;;  %p257_p3 = scmp.ne.s32.totalorder %s2709_s10, %s2705_s30 }
   0xd   : > { %s3370_s17 = smov (%p38_p0, %s36_s17), 0  ;;  %p258_p5 = scmp.eq.s32.totalorder %s1948_s16, 1 }
   0xe   : > { %p2826_p4 = por %p252_p2, %p251_p1  ;;  %s236_s20 = ssub.s32 %s2721_s13, %s3370_s17 }
   0xf   : > { %p1949_p6 = scmp.ge.s32.totalorder %s2725_s14, 1  ;;  %p239_p7 = scmp.eq.s32.totalorder %s236_s20, 0 }
  0x10   : > { %s3353_s19 = scalar_select %p2826_p4, 1, 0 }
  0x11   : > { %p2833_p8 = por %p258_p5, %p257_p3  ;;  %p265_p9 = scmp.lt.s32.totalorder %s2725_s14, 3 }
  0x12   : > { %s2839_s22 = scalar_select %p239_p7, %s2713_s11, %s241_s18  }
  0x13   : > { %s3354_s21 = scalar_select %p2833_p8, 1, 0 }
  0x14   : > { %p2841_p10 = pnand %p1949_p6, %p265_p9  ;;  %p2845_p11 = scmp.eq.s32.totalorder %s1947_s15, 0 }
  0x15   : > { %s3357_s0 = sld [smem:[#allocation11_spill]] }
  0x16   : > { %s3355_s23 = scalar_select %p2841_p10, 1, 0 }
  0x17   : > { %s3356_s24 = scalar_select %p2845_p11, 1, 0 }
  0x18   : > { %p2377_p12 = pneg %p2841_p10  ;;  %s3358_s1 = sld [smem:[#allocation12_spill]] }
  0x1a   : > { %p2859_p13 = pnand %p2845_p11, %p2377_p12 }
  0x1b   : > { %s278_s27 = sshll.u32 %s3357_s0, 4  ;;  %s279_s27 = int_to_ptr.vmem [resolvable:$true] %s278_s27 }
  0x1c   : > { %s2611_s15 = scalar_lea.vmem %s279_s27, 32  ;;  %p2613_p1 = pneg %p2859_p13 }
  0x1d   : > { %p2612_p0 = scmp.ne.s32.totalorder %s279_s27, %s2611_s15  ;;  %p2619_p5 = scmp.lt.s32.totalorder %s279_s27, %s279_s27 }
  0x1e   : > { %s289_s16 = sshll.u32 %s3358_s1, 4  ;;  %p2620_p6 = scmp.lt.s32.totalorder %s2611_s15, %s2611_s15  ;;  %s290_s16 = int_to_ptr.vmem [resolvable:$true] %s289_s16 }
  0x1f   : > { %p2614_p2 = pnand %p2613_p1, %p2612_p0 }
  0x20   : > { %p2621_p7 = por %p2620_p6, %p2619_p5 }
  0x21   : > { %p2615_p3 = pneg %p2614_p2 }
  0x23   : > { %p2622_p9 = pnand %p2621_p7, %p2615_p3 }
  0x25   : > { %2625 = shalt.err (!%p2622_p9)
}
  0x26   : > { %s2727_s20 = smov [#allocation2]   ;;  %s2626_s25 = scalar_lea.vmem %s290_s16, 32 }
  0x27   : > { %2380 = dma.vmem_to_smem (!%p2859_p13), %s279_s27, 32, %s2727_s20, [#allocation4]  }
  0x28   : > { %p2627_p12 = scmp.ne.s32.totalorder %s290_s16, %s2626_s25  ;;  %p2634_p11 = scmp.lt.s32.totalorder %s290_s16, %s290_s16 }
  0x29   : > { %p2635_p10 = scmp.lt.s32.totalorder %s2626_s25, %s2626_s25 }
  0x2a   : > { %p2629_p8 = pnand %p2627_p12, %p2613_p1 }
  0x2b   : > { %p2636_p0 = por %p2635_p10, %p2634_p11 }
  0x2c   : > { %p2630_p4 = pneg %p2629_p8 }
  0x2e   : > { %p2637_p2 = pnand %p2636_p0, %p2630_p4 }
  0x30   : > { %2640 = shalt.err (!%p2637_p2)
}
  0x31   : > { %s2728_s26 = smov [#allocation5]   ;;  %p3360_p3 = scmp.ne.s32.totalorder %s3355_s23, 0 }
  0x32   : > { %2383 = dma.vmem_to_smem (!%p2859_p13), %s290_s16, 32, %s2728_s26, [#allocation6]  }
  0x33   : > { %333 = sbr.rel (%p3360_p3) target bundleno = 1113 (0x459), region = 56  ;;  %p3361_p5 = scmp.ne.s32.totalorder (!%p3360_p3), %s3356_s24, 0 }
  0x38   : > { %2692 = dma.done.wait (%p3361_p5), [#allocation4], 32  }
  0x39   : > { %2694 = vsyncadd (%p3361_p5), [#allocation4], 4294967264 }
  0x3a   : > { %2696 = dma.done.wait (%p3361_p5), [#allocation6], 32  }
  0x3b   : > { %2698 = vsyncadd (%p3361_p5), [#allocation6], 4294967264 }
  0x3c   : > { %343 = sfence }
  0x3d   : > { %v2449_v0 = vld [vmem:[%s3340_s3 + $0x14] ss:$8 sps:$4 sm:$0xff]   ;;  %p379_p4 = scmp.lt.s32.totalorder %s2717_s12, 1  ;;  %v2451_v1 = vld [vmem:[%s3340_s3 + $0x10] ss:$8 sps:$4 sm:$0xff]   ;;  %v2729_v2 = vmov 0   ;;  %v411_v47 = vlaneseq }
  0x3e   : > { %477 = vmatprep.mubr.bf16.mxu0 %v2729_v2  ;;  %s2888_s16 = sshll.u32 %s2717_s12, 7  ;;  %457 = vmatprep.subr.bf16.mxu0 %v2449_v0  ;;  %v2452_v3 = vld [vmem:[%s3340_s3 + $0x4] ss:$8 sps:$4 sm:$0xff]   ;;  %v2454_v4 = vld [vmem:[%s3340_s3] ss:$8 sps:$4 sm:$0xff]   ;;  %v2455_v5 = vld [vmem:[%s3342_s5 + $0x78] sm:$0xff]  }
  0x3f   : > { %s380_s25 = scalar_select %p379_p4, %s2717_s12, 1  ;;  %458 = vmatpush1.bf16.msra.mxu0 %v2451_v1  ;;  %v2456_v6 = vld [vmem:[%s3342_s5 + $0x38] sm:$0xff]   ;;  %2234 = vmatprep.subr.bf16.mxu1 %v2455_v5  ;;  %v2459_v10 = vld [vmem:[%s3342_s5 + $0x70] sm:$0xff]   ;;  %vm441_vm0 = vcmask 261120   ;;  %v2463_v22 = vld [vmem:[%s3342_s5 + $0x68] sm:$0xff]   ;;  %v412_v48 = vshrl.u32 %v411_v47, 7 }
  0x40   : > { %s396_s28 = sld [smem:[#allocation2 + %s2888_s16]]  ;;  %459 = vmatprep.subr.bf16.mxu0 %v2452_v3  ;;  %2235 = vmatpush3.bf16.msra.mxu1 %v2456_v6  ;;  %v2457_v7 = vld [vmem:[%s3343_s6 + $0x78] sm:$0xff]   ;;  %v2460_v12 = vld [vmem:[%s3342_s5 + $0x30] sm:$0xff]   ;;  %v2465_v23 = vld [vmem:[%s3343_s6 + $0x68] sm:$0xff]   ;;  %s865_s15 = sadd.s32 1, %s2888_s16  ;;  %vm390_vm1 = vcmask 1048320  }
  0x41   : > { %s2366_s0 = smul.u32 48, %s380_s25  ;;  %s400_s1 = sld [smem:[#allocation5 + %s2888_s16]]  ;;  %2236 = vmatprep.subr.bf16.mxu1 %v2459_v10  ;;  %v2458_v16 = vld [vmem:[%s3343_s6 + $0x38] sm:$0xff]   ;;  %v2461_v19 = vld [vmem:[%s3343_s6 + $0x70] sm:$0xff]   ;;  %v2464_v24 = vld [vmem:[%s3342_s5 + $0x28] sm:$0xff]   ;;  %v3006_v49 = vsub.s32 1, %v412_v48 }
  0x42   : > { %v2462_v21 = vld [vmem:[%s3343_s6 + $0x30] sm:$0xff]   ;;  %v2466_v25 = vld [vmem:[%s3343_s6 + $0x28] sm:$0xff]   ;;  %v2467_v26 = vld [vmem:[%s3342_s5 + $0x60] sm:$0xff]   ;;  %v3011_v51 = vsub.s32 0, %v412_v48  ;;  %s870_s20 = sld [smem:[#allocation5 + %s865_s15]]  ;;  %s375_s24 = sand.u32 1, %s2709_s10  }
  0x43   : > { %s2911_s26 = scalar_lea.vmem %s3339_s2, %s2366_s0  ;;  %460 = vmatpush1.bf16.msra.mxu0 %v2454_v4  ;;  %v2469_v27 = vld [vmem:[%s3343_s6 + $0x60] sm:$0xff]   ;;  %v2471_v30 = vld [vmem:[%s3342_s5 + $0x58] sm:$0xff]   ;;  %v2475_v34 = vld [vmem:[%s3342_s5 + $0x50] sm:$0xff]   ;;  %s1956_s18 = sshll.u32 %s375_s24, 4  ;;  %vm1343_vm2 = vcmask 523520   ;;  %vm1827_vm3 = vcmask 785920  }
  0x44   : > { %v393_v8 = vld [vmem:[%s2911_s26] sm:$0xff]  ;;  %v394_v9 = vld [vmem:[%s2911_s26 + $0x8] sm:$0xff]  ;;  %2256 = vmatprep.subr.bf16.mxu0 %v2457_v7  ;;  %2237 = vmatpush3.bf16.msra.mxu1 %v2460_v12  ;;  %v2473_v31 = vld [vmem:[%s3343_s6 + $0x58] sm:$0xff]   ;;  %s1349_s25 = sadd.s32 2, %s2888_s16  ;;  %s2731_s0 = smov 32  }
  0x45   : > { %2238 = vmatprep.subr.bf16.mxu1 %v2463_v22  ;;  %v2468_v28 = vld [vmem:[%s3342_s5 + $0x20] sm:$0xff]   ;;  %v2472_v32 = vld [vmem:[%s3342_s5 + $0x18] sm:$0xff]   ;;  %v2477_v35 = vld [vmem:[%s3343_s6 + $0x50] sm:$0xff]   ;;  %s1350_s23 = sld [smem:[#allocation2 + %s1349_s25]]  ;;  %s2233_s27 = sshll.u32 %s2717_s12, 8 }
  0x46   : > { %v397_v11 = vstv %s396_s28  ;;  %v2470_v29 = vld [vmem:[%s3343_s6 + $0x20] sm:$0xff]   ;;  %v2474_v33 = vld [vmem:[%s3343_s6 + $0x18] sm:$0xff]   ;;  %v2476_v36 = vld [vmem:[%s3342_s5 + $0x10] sm:$0xff]   ;;  %s866_s28 = sld [smem:[#allocation2 + %s865_s15]]  ;;  %s3131_s15 = scalar_lea.vmem [#allocation7], %s1956_s18 }
  0x47   : > { %v398_v13 = vmul.f32 %v397_v11, %v393_v8  ;;  %v399_v14 = vmul.f32 %v397_v11, %v394_v9  ;;  %v401_v15 = vstv %s400_s1  ;;  %v2478_v37 = vld [vmem:[%s3343_s6 + $0x10] sm:$0xff]   ;;  %v2479_v38 = vld [vmem:[%s3342_s5 + $0x48] sm:$0xff]   ;;  %v2483_v42 = vld [vmem:[%s3342_s5 + $0x40] sm:$0xff]   ;;  %s1354_s29 = sld [smem:[#allocation5 + %s1349_s25]]  ;;  %s2732_s1 = smov 64  }
  0x48   : > { %2239 = vmatpush3.bf16.msra.mxu1 %v2464_v24  ;;  %v2481_v39 = vld [vmem:[%s3343_s6 + $0x48] sm:$0xff]   ;;  %v2485_v43 = vld [vmem:[%s3343_s6 + $0x40] sm:$0xff]   ;;  %v2489_v46 = vld [vmem:[%s3340_s3 + $0x34] ss:$8 sps:$4 sm:$0xff]   ;;  %v871_v10 = vstv %s870_s20  ;;  %s1846_s25 = sshll.u32 %s3131_s15, 4  ;;  %s3285_s16 = scalar_lea.hbm %s3346_s9, %s2233_s27  ;;  %s3287_s25 = int_to_ptr.vmem [resolvable:$true] %s1846_s25 }
  0x49   : > { %v402_v17 = vadd.f32 %v401_v15, %v398_v13  ;;  %v403_v18 = vadd.f32 %v401_v15, %v399_v14  ;;  %2240 = vmatprep.subr.bf16.mxu1 %v2467_v26  ;;  %v2480_v40 = vld [vmem:[%s3342_s5 + $0x8] sm:$0xff]   ;;  %v2484_v44 = vld [vmem:[%s3342_s5] sm:$0xff]   ;;  %v2000_v62 = vld [vmem:[%s2911_s26 + $0x10] sm:$0xff]  ;;  %s2641_s18 = scalar_lea.vmem %s3287_s25, 256  ;;  %p3362_p10 = scmp.ne.s32.totalorder %s3353_s19, 0 }
  0x4a   : > { %v2482_v41 = vld [vmem:[%s3343_s6 + $0x8] sm:$0xff]   ;;  %v2486_v45 = vld [vmem:[%s3343_s6] sm:$0xff]   ;;  %v2001_v63 = vld [vmem:[%s2911_s26 + $0x18] sm:$0xff]  ;;  %p2642_p8 = scmp.ne.s32.totalorder %s3287_s25, %s2641_s18  ;;  %s2733_s12 = smov [#allocation7]  }
  0x4b   : > { %v404_v20 = vpack.c.bf16 %v403_v18, %v402_v17  ;;  %v409_v50 = vld [vmem:[%s3341_s4] sm:$0x3]  ;;  %v2487_v9 = vld [vmem:[%s3340_s3 + $0x30] ss:$8 sps:$4 sm:$0xff]   ;;  %v2492_v12 = vld [vmem:[%s3340_s3 + $0x24] ss:$8 sps:$4 sm:$0xff]  }
  0x4c   : > { %2241 = vmatpush3.bf16.msra.mxu1 %v2468_v28  ;;  %v418_v52 = vrot.slane %v409_v50, %v3006_v49  ;;  %v414_v54 = vrot.slane %v409_v50, %v3011_v51  ;;  %v867_v0 = vstv %s866_s28  ;;  %v2490_v15 = vld [vmem:[%s3340_s3 + $0x20] ss:$8 sps:$4 sm:$0xff]   ;;  %v2493_v17 = vld [vmem:[%s3342_s5 + $0xf8] sm:$0xff]   ;;  %v2499_v22 = vld [vmem:[%s3343_s6 + $0xf0] sm:$0xff]   ;;  %p2643_p11 = pnand %p2642_p8, %p3362_p10  ;;  %s2645_s28 = sshll.u32 %s2733_s12, 4  ;;  %s2646_s28 = int_to_ptr.vmem [resolvable:$false] %s2645_s28 }
  0x4d   : > { %1963 = vmatmul.mubr.msk.bf16.vlgmr.msra.gmra.mxu0 %vm441_vm0, %v404_v20  ;;  %2242 = vmatprep.subr.bf16.mxu1 %v2471_v30  ;;  %v868_v5 = vmul.f32 %v2000_v62, %v867_v0  ;;  %v869_v6 = vmul.f32 %v2001_v63, %v867_v0  ;;  %v2495_v18 = vld [vmem:[%s3343_s6 + $0xf8] sm:$0xff]   ;;  %v2500_v24 = vld [vmem:[%s3343_s6 + $0xb0] sm:$0xff]   ;;  %v2503_v26 = vld [vmem:[%s3343_s6 + $0xe8] sm:$0xff]   ;;  %p2648_p1 = scmp.lt.s32.totalorder %s3287_s25, %s2646_s28 }
  0x4e   : > { %2257 = vmatpush3.bf16.msra.mxu0 %v2458_v16  ;;  %v2496_v20 = vld [vmem:[%s3343_s6 + $0xb8] sm:$0xff]   ;;  %v2504_v28 = vld [vmem:[%s3343_s6 + $0xa8] sm:$0xff]   ;;  %v2507_v30 = vld [vmem:[%s3343_s6 + $0xe0] sm:$0xff]   ;;  %p2644_p13 = pneg %p2643_p11 }
  0x4f   : > { %2258 = vmatprep.subr.bf16.mxu0 %v2461_v19  ;;  %v872_v13 = vadd.f32 %v871_v10, %v868_v5  ;;  %v873_v14 = vadd.f32 %v871_v10, %v869_v6  ;;  %v2494_v19 = vld [vmem:[%s3342_s5 + $0xb8] sm:$0xff]   ;;  %v2523_v47 = vld [vmem:[%s3343_s6 + $0xc0] sm:$0xff]  }
  0x50   : > { %2243 = vmatpush3.bf16.msra.mxu1 %v2472_v32  ;;  %v2508_v32 = vld [vmem:[%s3343_s6 + $0xa0] sm:$0xff]   ;;  %v2527_v50 = vld [vmem:[%s3340_s3 + $0x54] ss:$8 sps:$4 sm:$0xff]  }
  0x51   : > { %2244 = vmatprep.subr.bf16.mxu1 %v2475_v34  ;;  %v874_v16 = vpack.c.bf16 %v873_v14, %v872_v13  ;;  %v2511_v34 = vld [vmem:[%s3343_s6 + $0xd8] sm:$0xff]   ;;  %v2524_v48 = vld [vmem:[%s3343_s6 + $0x80] sm:$0xff]  }
  0x52   : > { %2259 = vmatpush3.bf16.msra.mxu0 %v2462_v21  ;;  %v2497_v21 = vld [vmem:[%s3342_s5 + $0xf0] sm:$0xff]   ;;  %v2006_v0 = vld [vmem:[%s3341_s4 + $0x2] sm:$0x3] }
  0x53   : > { %2260 = vmatprep.subr.bf16.mxu0 %v2465_v23  ;;  %v2498_v23 = vld [vmem:[%s3342_s5 + $0xb0] sm:$0xff]  }
  0x54   : > { %2245 = vmatpush3.bf16.msra.mxu1 %v2476_v36  ;;  %v2512_v36 = vld [vmem:[%s3343_s6 + $0x98] sm:$0xff]  }
  0x55   : > { %2246 = vmatprep.subr.bf16.mxu1 %v2479_v38  ;;  %v2515_v38 = vld [vmem:[%s3343_s6 + $0xd0] sm:$0xff]  }
  0x56   : > { %2261 = vmatpush3.bf16.msra.mxu0 %v2466_v25  ;;  %v2501_v25 = vld [vmem:[%s3342_s5 + $0xe8] sm:$0xff]  }
  0x57   : > { %2262 = vmatprep.subr.bf16.mxu0 %v2469_v27  ;;  %v2502_v27 = vld [vmem:[%s3342_s5 + $0xa8] sm:$0xff]  }
  0x58   : > { %2247 = vmatpush3.bf16.msra.mxu1 %v2480_v40  ;;  %v2516_v40 = vld [vmem:[%s3343_s6 + $0x90] sm:$0xff]  }
  0x59   : > { %2248 = vmatprep.subr.bf16.mxu1 %v2483_v42  ;;  %v2519_v42 = vld [vmem:[%s3343_s6 + $0xc8] sm:$0xff]  }
  0x5a   : > { %2263 = vmatpush3.bf16.msra.mxu0 %v2470_v29  ;;  %v2505_v29 = vld [vmem:[%s3342_s5 + $0xe0] sm:$0xff]  }
  0x5b   : > { %2264 = vmatprep.subr.bf16.mxu0 %v2473_v31  ;;  %v2506_v31 = vld [vmem:[%s3342_s5 + $0xa0] sm:$0xff]  }
  0x5c   : > { %2249 = vmatpush3.bf16.msra.mxu1 %v2484_v44  ;;  %v2520_v44 = vld [vmem:[%s3343_s6 + $0x88] sm:$0xff]  }
  0x5d   : > { %928 = vmatprep.subr.bf16.mxu1 %v2489_v46  ;;  %v2522_v46 = vld [vmem:[%s3342_s5 + $0x80] sm:$0xff]  }
  0x5e   : > { %2265 = vmatpush3.bf16.msra.mxu0 %v2474_v33  ;;  %v2509_v33 = vld [vmem:[%s3342_s5 + $0xd8] sm:$0xff]  }
  0x5f   : > { %2266 = vmatprep.subr.bf16.mxu0 %v2477_v35  ;;  %v2510_v35 = vld [vmem:[%s3342_s5 + $0x98] sm:$0xff]  }
  0x62   : > { %2267 = vmatpush3.bf16.msra.mxu0 %v2478_v37  ;;  %v2513_v37 = vld [vmem:[%s3342_s5 + $0xd0] sm:$0xff]  }
  0x63   : > { %2268 = vmatprep.subr.bf16.mxu0 %v2481_v39  ;;  %v2514_v39 = vld [vmem:[%s3342_s5 + $0x90] sm:$0xff]  }
  0x66   : > { %2269 = vmatpush3.bf16.msra.mxu0 %v2482_v41  ;;  %v2517_v41 = vld [vmem:[%s3342_s5 + $0xc8] sm:$0xff]  }
  0x67   : > { %2270 = vmatprep.subr.bf16.mxu0 %v2485_v43  ;;  %v2518_v43 = vld [vmem:[%s3342_s5 + $0x88] sm:$0xff]  }
  0x6a   : > { %2271 = vmatpush3.bf16.msra.mxu0 %v2486_v45  ;;  %v2521_v45 = vld [vmem:[%s3342_s5 + $0xc0] sm:$0xff]  }
  0x6b   : > { %2278 = vmatprep.subr.bf16.mxu0 %v2493_v17 }
 0x10d   : > { %v479_v53 = vpop.f32.mrf.mxu0 }
 0x10e   : > { %v480_v59 = vadd.f32 %v479_v53, %v414_v54 }
 0x10f   : > { %v481_v55 = vpop.f32.mrf.mxu0 }
 0x110   : > { %v482_v56 = vadd.f32 %v481_v55, %v418_v52 }
 0x111   : > { %v483_v57 = vpop.f32.mrf.mxu0 }
 0x112   : > { %v484_v58 = vadd.f32 %v483_v57, %v414_v54  ;;  %2563 = vtanh.f32 %v482_v56  ;;  %v1981_v56 = vld [vmem:[%s3345_s8] ss:$0 sm:$0xff] }
 0x113   : > { %v485_v60 = vpop.f32.mrf.mxu0 }
 0x114   : > { %v486_v61 = vadd.f32 %v485_v60, %v418_v52  ;;  %2565 = vtanh.f32 %v484_v58  ;;  %v2730_v52 = vmov 0.0  }
 0x115   : > { %391 = vst.msk [vmem:[%s3131_s15] sm:$0xff] %vm390_vm1, %v2730_v52  ;;  %392 = vst.msk [vmem:[%s3131_s15 + $0x8] sm:$0xff] %vm390_vm1, %v2730_v52  ;;  %v2535_v52 = vld [vmem:[%s3342_s5 + $0x170] sm:$0xff]  }
 0x116   : > { %2567 = vtanh.f32 %v486_v61 }
 0x117   : > { %2569 = vtanh.f32 %v480_v59 }
 0x11f   : > { %v2564_v1 = vpop.eup %2563 }
 0x121   : > { %v2566_v3 = vpop.eup %2565 }
 0x123   : > { %v2568_v4 = vpop.eup %2567 }
 0x124   : > { %v2570_v7 = vpop.eup %2569  ;;  %v493_v8 = vpack.c.bf16 %v2568_v4, %v2564_v1  ;;  %v890_v4 = vrot.slane %v2006_v0, %v3006_v49 }
 0x125   : > { %v492_v11 = vpack.c.bf16 %v2566_v3, %v2570_v7  ;;  %v886_v7 = vrot.slane %v2006_v0, %v3011_v51  ;;  %v2547_v0 = vld [vmem:[%s3342_s5 + $0x158] sm:$0xff]  }
 0x126   : > { %661 = vmatprep.mubr.bf16.mxu1 %v493_v8  ;;  %837 = vmatprep.mubr.bf16.mxu0 %v493_v8 }
 0x127   : > { %662 = vmatmul.mubr.bf16.vlgmr.msra.gmra.mxu1 %v492_v11  ;;  %838 = vmatmul.mubr.bf16.vlgmr.msra.gmra.mxu0 %v492_v11 }
 0x128   : > { %929 = vmatpush1.bf16.msra.mxu1 %v2487_v9  ;;  %948 = vmatprep.mubr.bf16.mxu1 %v2729_v2 }
 0x129   : > { %930 = vmatprep.subr.bf16.mxu1 %v2492_v12  ;;  %2279 = vmatpush3.bf16.msra.mxu0 %v2494_v19 }
 0x12a   : > { %2280 = vmatprep.subr.bf16.mxu0 %v2497_v21  ;;  %v2115_v21 = vld [vmem:[%s2911_s26 + $0x28] sm:$0xff] }
 0x12c   : > { %931 = vmatpush1.bf16.msra.mxu1 %v2490_v15 }
 0x12d   : > { %2300 = vmatprep.subr.bf16.mxu1 %v2495_v18  ;;  %2281 = vmatpush3.bf16.msra.mxu0 %v2498_v23 }
 0x12e   : > { %2282 = vmatprep.subr.bf16.mxu0 %v2501_v25 }
 0x12f   : > { %2011 = vmatmul.mubr.msk.bf16.vlgmr.msra.gmra.mxu1 %vm441_vm0, %v874_v16 }
 0x130   : > { %2301 = vmatpush3.bf16.msra.mxu1 %v2496_v20  ;;  %v2114_v20 = vld [vmem:[%s2911_s26 + $0x20] sm:$0xff]  ;;  %s2647_s26 = scalar_lea.vmem %s2646_s28, 512 }
 0x131   : > { %2302 = vmatprep.subr.bf16.mxu1 %v2499_v22  ;;  %2283 = vmatpush3.bf16.msra.mxu0 %v2502_v27  ;;  %v1351_v22 = vstv %s1350_s23  ;;  %p2649_p6 = scmp.lt.s32.totalorder %s2647_s26, %s2641_s18 }
 0x132   : > { %2284 = vmatprep.subr.bf16.mxu0 %v2505_v29  ;;  %v1353_v27 = vmul.f32 %v2115_v21, %v1351_v22 }
 0x133   : > { %p2650_p7 = por %p2649_p6, %p2648_p1 }
 0x134   : > { %2303 = vmatpush3.bf16.msra.mxu1 %v2500_v24 }
 0x135   : > { %2304 = vmatprep.subr.bf16.mxu1 %v2503_v26  ;;  %2285 = vmatpush3.bf16.msra.mxu0 %v2506_v31  ;;  %v1352_v26 = vmul.f32 %v2114_v20, %v1351_v22  ;;  %v1355_v31 = vstv %s1354_s29  ;;  %v2095_v20 = vld [vmem:[%s3345_s8 + $0x1] ss:$0 sm:$0xff]  ;;  %p2651_p9 = pnand %p2650_p7, %p2644_p13 }
 0x136   : > { %2286 = vmatprep.subr.bf16.mxu0 %v2509_v33  ;;  %v2530_v33 = vld [vmem:[%s3340_s3 + $0x44] ss:$8 sps:$4 sm:$0xff]  }
 0x138   : > { %2305 = vmatpush3.bf16.msra.mxu1 %v2504_v28 }
 0x139   : > { %2306 = vmatprep.subr.bf16.mxu1 %v2507_v30  ;;  %2287 = vmatpush3.bf16.msra.mxu0 %v2510_v35  ;;  %v2525_v30 = vld [vmem:[%s3340_s3 + $0x50] ss:$8 sps:$4 sm:$0xff]   ;;  %v1964_v35 = vld [vmem:[%s3344_s7] ss:$0 sm:$0xff] }
 0x13a   : > { %2288 = vmatprep.subr.bf16.mxu0 %v2513_v37  ;;  %v1357_v37 = vadd.f32 %v1355_v31, %v1353_v27 }
 0x13c   : > { %2307 = vmatpush3.bf16.msra.mxu1 %v2508_v32 }
 0x13d   : > { %2308 = vmatprep.subr.bf16.mxu1 %v2511_v34  ;;  %2289 = vmatpush3.bf16.msra.mxu0 %v2514_v39 }
 0x13e   : > { %2290 = vmatprep.subr.bf16.mxu0 %v2517_v41 }
 0x140   : > { %2309 = vmatpush3.bf16.msra.mxu1 %v2512_v36  ;;  %v1356_v36 = vadd.f32 %v1355_v31, %v1352_v26 }
 0x141   : > { %2310 = vmatprep.subr.bf16.mxu1 %v2515_v38  ;;  %2291 = vmatpush3.bf16.msra.mxu0 %v2518_v43  ;;  %v2528_v38 = vld [vmem:[%s3340_s3 + $0x40] ss:$8 sps:$4 sm:$0xff]  }
 0x142   : > { %2292 = vmatprep.subr.bf16.mxu0 %v2521_v45 }
 0x144   : > { %2311 = vmatpush3.bf16.msra.mxu1 %v2516_v40 }
 0x145   : > { %2312 = vmatprep.subr.bf16.mxu1 %v2519_v42  ;;  %2293 = vmatpush3.bf16.msra.mxu0 %v2522_v46  ;;  %v1358_v42 = vpack.c.bf16 %v1357_v37, %v1356_v36 }
 0x146   : > { %1412 = vmatprep.subr.bf16.mxu0 %v2527_v50  ;;  %v2534_v50 = vld [vmem:[%s3343_s6 + $0x138] sm:$0xff]  }
 0x148   : > { %2313 = vmatpush3.bf16.msra.mxu1 %v2520_v44 }
 0x149   : > { %2314 = vmatprep.subr.bf16.mxu1 %v2523_v47  ;;  %v2532_v47 = vld [vmem:[%s3343_s6 + $0x178] sm:$0xff]  }
 0x14c   : > { %2315 = vmatpush3.bf16.msra.mxu1 %v2524_v48  ;;  %v2533_v48 = vld [vmem:[%s3342_s5 + $0x138] sm:$0xff]  }
 0x1e7   : > { %v2250_v53 = vpop.f32.mrf.mxu1  ;;  %v2272_v54 = vpop.f32.mrf.mxu0 }
 0x1e9   : > { %v2251_v55 = vpop.f32.mrf.mxu1  ;;  %v2273_v57 = vpop.f32.mrf.mxu0 }
 0x1ea   : > { %v2274_v58 = vadd.f32 %v2273_v57, %v2272_v54  ;;  %v2252_v34 = vadd.f32 %v2251_v55, %v2250_v53  ;;  %v2536_v53 = vld [vmem:[%s3343_s6 + $0x170] sm:$0xff]   ;;  %v2540_v57 = vld [vmem:[%s3343_s6 + $0x168] sm:$0xff]  }
 0x1eb   : > { %v2253_v59 = vpop.f32.mrf.mxu1  ;;  %v2275_v60 = vpop.f32.mrf.mxu0  ;;  %v2537_v54 = vld [vmem:[%s3342_s5 + $0x130] sm:$0xff]  }
 0x1ec   : > { %v840_v61 = vadd.f32 %v2274_v58, %v1981_v56  ;;  %v664_v39 = vadd.f32 %v2252_v34, %v1964_v35  ;;  %v2538_v55 = vld [vmem:[%s3343_s6 + $0x130] sm:$0xff]   ;;  %v2541_v58 = vld [vmem:[%s3342_s5 + $0x128] sm:$0xff]  }
 0x1ed   : > { %v2254_v62 = vpop.f32.mrf.mxu1  ;;  %v2276_v63 = vpop.f32.mrf.mxu0 }
 0x1ee   : > { %v1998_v1 = vmul.f32 -1.442695, %v840_v61  ;;  %v2277_v3 = vadd.f32 %v2276_v63, %v2275_v60  ;;  %v2255_v40 = vadd.f32 %v2254_v62, %v2253_v59  ;;  %v2542_v59 = vld [vmem:[%s3343_s6 + $0x128] sm:$0xff]   ;;  %v2543_v60 = vld [vmem:[%s3342_s5 + $0x160] sm:$0xff]  }
 0x1ef   : > { %v950_v5 = vpop.f32.mrf.mxu1  ;;  %v2544_v61 = vld [vmem:[%s3343_s6 + $0x160] sm:$0xff]  }
 0x1f0   : > { %2571 = vpow2.f32 %v1998_v1  ;;  %v843_v6 = vadd.f32 %v2277_v3, %v1981_v56  ;;  %v951_v13 = vadd.f32 %v950_v5, %v886_v7  ;;  %v667_v44 = vadd.f32 %v2255_v40, %v1964_v35  ;;  %v2539_v56 = vld [vmem:[%s3342_s5 + $0x168] sm:$0xff]   ;;  %v2545_v62 = vld [vmem:[%s3342_s5 + $0x120] sm:$0xff]   ;;  %v2548_v1 = vld [vmem:[%s3343_s6 + $0x158] sm:$0xff]  }
 0x1f1   : > { %v952_v8 = vpop.f32.mrf.mxu1  ;;  %v2546_v63 = vld [vmem:[%s3343_s6 + $0x120] sm:$0xff]   ;;  %v2549_v3 = vld [vmem:[%s3342_s5 + $0x118] sm:$0xff]   ;;  %v2551_v5 = vld [vmem:[%s3342_s5 + $0x150] sm:$0xff]  }
 0x1f2   : > { %v1999_v9 = vmul.f32 -1.442695, %v843_v6  ;;  %v953_v10 = vadd.f32 %v952_v8, %v890_v4  ;;  %v2552_v6 = vld [vmem:[%s3343_s6 + $0x150] sm:$0xff]  }
 0x1f3   : > { %v954_v11 = vpop.f32.mrf.mxu1  ;;  %v2554_v8 = vld [vmem:[%s3343_s6 + $0x110] sm:$0xff]  }
 0x1f4   : > { %2573 = vpow2.f32 %v1999_v9  ;;  %v955_v12 = vadd.f32 %v954_v11, %v886_v7  ;;  %v2553_v7 = vld [vmem:[%s3342_s5 + $0x110] sm:$0xff]   ;;  %v2555_v9 = vld [vmem:[%s3342_s5 + $0x148] sm:$0xff]  }
 0x1f5   : > { %v956_v14 = vpop.f32.mrf.mxu1  ;;  %2575 = vtanh.f32 %v953_v10  ;;  %v2556_v10 = vld [vmem:[%s3343_s6 + $0x148] sm:$0xff]  }
 0x1f6   : > { %v957_v15 = vadd.f32 %v956_v14, %v890_v4  ;;  %2577 = vtanh.f32 %v955_v12  ;;  %v2550_v4 = vld [vmem:[%s3343_s6 + $0x118] sm:$0xff]   ;;  %v2557_v11 = vld [vmem:[%s3342_s5 + $0x108] sm:$0xff]   ;;  %v2560_v14 = vld [vmem:[%s3343_s6 + $0x140] sm:$0xff]  }
 0x1f7   : > { %v2558_v12 = vld [vmem:[%s3343_s6 + $0x108] sm:$0xff]  }
 0x1f8   : > { %2579 = vtanh.f32 %v957_v15  ;;  %v2561_v15 = vld [vmem:[%s3342_s5 + $0x100] sm:$0xff]  }
 0x1f9   : > { %2581 = vtanh.f32 %v951_v13  ;;  %v2559_v13 = vld [vmem:[%s3342_s5 + $0x140] sm:$0xff]  }
 0x1fd   : > { %v2572_v16 = vpop.eup %2571 }
 0x1fe   : > { %v852_v17 = vadd.f32 1.0, %v2572_v16  ;;  %v2562_v16 = vld [vmem:[%s3343_s6 + $0x100] sm:$0xff]  }
 0x200   : > { %2583 = vrcp.f32 %v852_v17 }
 0x201   : > { %v2574_v18 = vpop.eup %2573 }
 0x202   : > { %v853_v19 = vadd.f32 1.0, %v2574_v18  ;;  %v2576_v23 = vpop.eup %2575 }
 0x203   : > { %v2578_v24 = vpop.eup %2577 }
 0x204   : > { %2585 = vrcp.f32 %v853_v19 }
 0x205   : > { %v2580_v25 = vpop.eup %2579 }
 0x206   : > { %v2582_v28 = vpop.eup %2581  ;;  %v964_v29 = vpack.c.bf16 %v2580_v25, %v2576_v23 }
 0x207   : > { %v963_v32 = vpack.c.bf16 %v2578_v24, %v2582_v28  ;;  %v2120_v28 = vld [vmem:[%s3341_s4 + $0x4] sm:$0x3] }
 0x208   : > { %1134 = vmatprep.mubr.bf16.mxu0 %v964_v29  ;;  %1312 = vmatprep.mubr.bf16.mxu1 %v964_v29  ;;  %v1374_v31 = vrot.slane %v2120_v28, %v3006_v49  ;;  %v1370_v34 = vrot.slane %v2120_v28, %v3011_v51 }
 0x209   : > { %1135 = vmatmul.mubr.bf16.vlgmr.msra.gmra.mxu0 %v963_v32  ;;  %1313 = vmatmul.mubr.bf16.vlgmr.msra.gmra.mxu1 %v963_v32 }
 0x20a   : > { %1413 = vmatpush1.bf16.msra.mxu0 %v2525_v30  ;;  %1432 = vmatprep.mubr.bf16.mxu0 %v2729_v2  ;;  %v2531_v2 = vld [vmem:[%s3342_s5 + $0x178] sm:$0xff]  }
 0x20b   : > { %1414 = vmatprep.subr.bf16.mxu0 %v2530_v33  ;;  %2322 = vmatprep.subr.bf16.mxu1 %v2531_v2 }
 0x20c   : > { %2323 = vmatpush3.bf16.msra.mxu1 %v2533_v48 }
 0x20d   : > { %v2584_v41 = vpop.eup %2583  ;;  %2324 = vmatprep.subr.bf16.mxu1 %v2535_v52 }
 0x20e   : > { %1415 = vmatpush1.bf16.msra.mxu0 %v2528_v38  ;;  %v858_v43 = vmul.f32 %v2584_v41, %v664_v39 }
 0x20f   : > { %2344 = vmatprep.subr.bf16.mxu0 %v2532_v47 }
 0x210   : > { %860 = vst.msk [vmem:[%s3131_s15] sm:$0xff] %vm441_vm0, %v858_v43  ;;  %2325 = vmatpush3.bf16.msra.mxu1 %v2537_v54 }
 0x211   : > { %v2586_v45 = vpop.eup %2585  ;;  %2125 = vmatmul.mubr.msk.bf16.vlgmr.msra.gmra.mxu0 %vm441_vm0, %v1358_v42  ;;  %2326 = vmatprep.subr.bf16.mxu1 %v2539_v56 }
 0x212   : > { %v859_v46 = vmul.f32 %v2586_v45, %v667_v44  ;;  %2345 = vmatpush3.bf16.msra.mxu0 %v2534_v50 }
 0x213   : > { %2346 = vmatprep.subr.bf16.mxu0 %v2536_v53  ;;  %v2045_v53 = vld [vmem:[%s3344_s7 + $0x1] ss:$0 sm:$0xff] }
 0x214   : > { %861 = vst.msk [vmem:[%s3131_s15 + $0x8] sm:$0xff] %vm441_vm0, %v859_v46  ;;  %2327 = vmatpush3.bf16.msra.mxu1 %v2541_v58 }
 0x215   : > { %2328 = vmatprep.subr.bf16.mxu1 %v2543_v60 }
 0x216   : > { %2347 = vmatpush3.bf16.msra.mxu0 %v2538_v55 }
 0x217   : > { %2348 = vmatprep.subr.bf16.mxu0 %v2540_v57 }
 0x218   : > { %2329 = vmatpush3.bf16.msra.mxu1 %v2545_v62 }
 0x219   : > { %2330 = vmatprep.subr.bf16.mxu1 %v2547_v0  ;;  %v2209_v0 = vld [vmem:[%s3345_s8 + $0x2] ss:$0 sm:$0xff] }
 0x21a   : > { %2349 = vmatpush3.bf16.msra.mxu0 %v2542_v59 }
 0x21b   : > { %2350 = vmatprep.subr.bf16.mxu0 %v2544_v61 }
 0x21c   : > { %2331 = vmatpush3.bf16.msra.mxu1 %v2549_v3 }
 0x21d   : > { %2332 = vmatprep.subr.bf16.mxu1 %v2551_v5 }
 0x21e   : > { %2351 = vmatpush3.bf16.msra.mxu0 %v2546_v63 }
 0x21f   : > { %2352 = vmatprep.subr.bf16.mxu0 %v2548_v1 }
 0x220   : > { %2333 = vmatpush3.bf16.msra.mxu1 %v2553_v7 }
 0x221   : > { %2334 = vmatprep.subr.bf16.mxu1 %v2555_v9 }
 0x222   : > { %2353 = vmatpush3.bf16.msra.mxu0 %v2550_v4 }
 0x223   : > { %2354 = vmatprep.subr.bf16.mxu0 %v2552_v6 }
 0x224   : > { %2335 = vmatpush3.bf16.msra.mxu1 %v2557_v11 }
 0x225   : > { %2336 = vmatprep.subr.bf16.mxu1 %v2559_v13 }
 0x226   : > { %2355 = vmatpush3.bf16.msra.mxu0 %v2554_v8 }
 0x227   : > { %2356 = vmatprep.subr.bf16.mxu0 %v2556_v10 }
 0x228   : > { %2337 = vmatpush3.bf16.msra.mxu1 %v2561_v15 }
 0x22a   : > { %2357 = vmatpush3.bf16.msra.mxu0 %v2558_v12 }
 0x22b   : > { %2358 = vmatprep.subr.bf16.mxu0 %v2560_v14 }
 0x22e   : > { %2359 = vmatpush3.bf16.msra.mxu0 %v2562_v16 }
 0x2c9   : > { %v2294_v17 = vpop.f32.mrf.mxu0  ;;  %v2316_v18 = vpop.f32.mrf.mxu1 }
 0x2cb   : > { %v2295_v19 = vpop.f32.mrf.mxu0  ;;  %v2317_v21 = vpop.f32.mrf.mxu1 }
 0x2cc   : > { %v2318_v22 = vadd.f32 %v2317_v21, %v2316_v18  ;;  %v2296_v52 = vadd.f32 %v2295_v19, %v2294_v17  ;;  %v2159_v19 = vld [vmem:[%s3344_s7 + $0x2] ss:$0 sm:$0xff] }
 0x2cd   : > { %v2297_v23 = vpop.f32.mrf.mxu0  ;;  %v2319_v24 = vpop.f32.mrf.mxu1 }
 0x2ce   : > { %v1315_v25 = vadd.f32 %v2318_v22, %v2095_v20  ;;  %v1137_v54 = vadd.f32 %v2296_v52, %v2045_v53 }
 0x2cf   : > { %v2298_v26 = vpop.f32.mrf.mxu0  ;;  %v2320_v27 = vpop.f32.mrf.mxu1 }
 0x2d0   : > { %v2112_v29 = vmul.f32 -1.442695, %v1315_v25  ;;  %v2321_v30 = vadd.f32 %v2320_v27, %v2319_v24  ;;  %v2299_v55 = vadd.f32 %v2298_v26, %v2297_v23 }
 0x2d1   : > { %v1434_v32 = vpop.f32.mrf.mxu0 }
 0x2d2   : > { %2587 = vpow2.f32 %v2112_v29  ;;  %v1318_v33 = vadd.f32 %v2321_v30, %v2095_v20  ;;  %v1435_v40 = vadd.f32 %v1434_v32, %v1370_v34  ;;  %v1140_v58 = vadd.f32 %v2299_v55, %v2045_v53 }
 0x2d3   : > { %v1436_v35 = vpop.f32.mrf.mxu0 }
 0x2d4   : > { %v2113_v36 = vmul.f32 -1.442695, %v1318_v33  ;;  %v1437_v37 = vadd.f32 %v1436_v35, %v1374_v31 }
 0x2d5   : > { %v1438_v38 = vpop.f32.mrf.mxu0 }
 0x2d6   : > { %2589 = vpow2.f32 %v2113_v36  ;;  %v1439_v39 = vadd.f32 %v1438_v38, %v1370_v34 }
 0x2d7   : > { %v1440_v41 = vpop.f32.mrf.mxu0  ;;  %2591 = vtanh.f32 %v1437_v37 }
 0x2d8   : > { %v1441_v42 = vadd.f32 %v1440_v41, %v1374_v31  ;;  %2593 = vtanh.f32 %v1439_v39 }
 0x2da   : > { %2595 = vtanh.f32 %v1441_v42 }
 0x2db   : > { %2597 = vtanh.f32 %v1435_v40 }
 0x2df   : > { %v2588_v43 = vpop.eup %2587 }
 0x2e0   : > { %v1327_v49 = vadd.f32 1.0, %v2588_v43 }
 0x2e2   : > { %2599 = vrcp.f32 %v1327_v49 }
 0x2e3   : > { %v2590_v44 = vpop.eup %2589 }
 0x2e4   : > { %v1328_v45 = vadd.f32 1.0, %v2590_v44  ;;  %v2592_v46 = vpop.eup %2591 }
 0x2e5   : > { %v2594_v51 = vpop.eup %2593 }
 0x2e6   : > { %2601 = vrcp.f32 %v1328_v45 }
 0x2e7   : > { %v2596_v2 = vpop.eup %2595 }
 0x2e8   : > { %v2598_v47 = vpop.eup %2597  ;;  %v1448_v48 = vpack.c.bf16 %v2596_v2, %v2592_v46 }
 0x2e9   : > { %v1447_v50 = vpack.c.bf16 %v2594_v51, %v2598_v47 }
 0x2ea   : > { %1618 = vmatprep.mubr.bf16.mxu1 %v1448_v48  ;;  %1796 = vmatprep.mubr.bf16.mxu0 %v1448_v48 }
 0x2eb   : > { %1619 = vmatmul.mubr.bf16.vlgmr.msra.gmra.mxu1 %v1447_v50  ;;  %1797 = vmatmul.mubr.bf16.vlgmr.msra.gmra.mxu0 %v1447_v50 }
 0x2ef   : > { %v2600_v56 = vpop.eup %2599 }
 0x2f0   : > { %v1333_v57 = vmul.f32 %v2600_v56, %v1137_v54 }
 0x2f2   : > { %1337 = vrot.lane.b32.xlu0 %v1333_v57, %s2731_s0 }
 0x2f3   : > { %v2602_v59 = vpop.eup %2601 }
 0x2f4   : > { %v1334_v60 = vmul.f32 %v2602_v59, %v1140_v58 }
 0x2f6   : > { %1339 = vrot.lane.b32.xlu0 %v1334_v60, %s2731_s0  ;;  %s3292_s0 = scalar_lea.sflag [#allocation3], %s375_s24 }
 0x364   : > { %v1338_v61 = vpop.permute.xlu0 %1337 }
 0x365   : > { %1344 = vst.msk [vmem:[%s3131_s15] sm:$0xff] %vm1343_vm2, %v1338_v61 }
 0x368   : > { %v1340_v62 = vpop.permute.xlu0 %1339 }
 0x369   : > { %1345 = vst.msk [vmem:[%s3131_s15 + $0x8] sm:$0xff] %vm1343_vm2, %v1340_v62 }
 0x3ab   : > { %v2360_v63 = vpop.f32.mrf.mxu0  ;;  %v2338_v12 = vpop.f32.mrf.mxu1 }
 0x3ad   : > { %v2361_v1 = vpop.f32.mrf.mxu0  ;;  %v2339_v15 = vpop.f32.mrf.mxu1 }
 0x3ae   : > { %v2362_v3 = vadd.f32 %v2361_v1, %v2360_v63  ;;  %v2340_v18 = vadd.f32 %v2339_v15, %v2338_v12 }
 0x3af   : > { %v2363_v4 = vpop.f32.mrf.mxu0  ;;  %v2341_v17 = vpop.f32.mrf.mxu1 }
 0x3b0   : > { %v1799_v5 = vadd.f32 %v2362_v3, %v2209_v0  ;;  %v1621_v21 = vadd.f32 %v2340_v18, %v2159_v19 }
 0x3b1   : > { %v2364_v6 = vpop.f32.mrf.mxu0  ;;  %v2342_v20 = vpop.f32.mrf.mxu1 }
 0x3b2   : > { %v2226_v7 = vmul.f32 -1.442695, %v1799_v5  ;;  %v2365_v8 = vadd.f32 %v2364_v6, %v2363_v4  ;;  %v2343_v22 = vadd.f32 %v2342_v20, %v2341_v17 }
 0x3b4   : > { %2603 = vpow2.f32 %v2226_v7  ;;  %v1802_v9 = vadd.f32 %v2365_v8, %v2209_v0  ;;  %v1624_v25 = vadd.f32 %v2343_v22, %v2159_v19 }
 0x3b6   : > { %v2227_v10 = vmul.f32 -1.442695, %v1802_v9 }
 0x3b8   : > { %2605 = vpow2.f32 %v2227_v10 }
 0x3c1   : > { %v2604_v11 = vpop.eup %2603 }
 0x3c2   : > { %v1811_v13 = vadd.f32 1.0, %v2604_v11 }
 0x3c4   : > { %2607 = vrcp.f32 %v1811_v13 }
 0x3c5   : > { %v2606_v14 = vpop.eup %2605 }
 0x3c6   : > { %v1812_v16 = vadd.f32 1.0, %v2606_v14 }
 0x3c8   : > { %2609 = vrcp.f32 %v1812_v16 }
 0x3d1   : > { %v2608_v23 = vpop.eup %2607 }
 0x3d2   : > { %v1817_v24 = vmul.f32 %v2608_v23, %v1621_v21 }
 0x3d4   : > { %1821 = vrot.lane.b32.xlu1 %v1817_v24, %s2732_s1 }
 0x3d5   : > { %v2610_v26 = vpop.eup %2609 }
 0x3d6   : > { %v1818_v27 = vmul.f32 %v2610_v26, %v1624_v25 }
 0x3d8   : > { %1823 = vrot.lane.b32.xlu1 %v1818_v27, %s2732_s1 }
 0x446   : > { %v1822_v28 = vpop.permute.xlu1 %1821 }
 0x447   : > { %1828 = vst.msk [vmem:[%s3131_s15] sm:$0xff] %vm1827_vm3, %v1822_v28 }
 0x44a   : > { %v1824_v29 = vpop.permute.xlu1 %1823 }
 0x44b   : > { %1829 = vst.msk [vmem:[%s3131_s15 + $0x8] sm:$0xff] %vm1827_vm3, %v1824_v29 }
 0x44c   : > { %2654 = shalt.err (!%p2651_p9)
}
 0x44d   : > { %s2655_s24 = scalar_lea.hbm %s3285_s16, 256  ;;  %s2659_s1 = scalar_lea.hbm %s3346_s9, 512 }
 0x44e   : > { %p2656_p12 = scmp.ne.s32.totalorder %s3285_s16, %s2655_s24  ;;  %p2660_p3 = scmp.lt.s32.totalorder %s3285_s16, %s3346_s9 }
 0x44f   : > { %p2661_p5 = scmp.lt.s32.totalorder %s2659_s1, %s2655_s24 }
 0x450   : > { %p2657_p0 = pnand %p2656_p12, %p3362_p10 }
 0x451   : > { %p2662_p4 = por %p2661_p5, %p2660_p3 }
 0x452   : > { %p2658_p2 = pneg %p2657_p0 }
 0x454   : > { %p2663_p8 = pnand %p2662_p4, %p2658_p2 }
 0x456   : > { %2666 = shalt.err (!%p2663_p8)
}
 0x457   : > { %s2734_s29 = smov 128   ;;  %s2735_s18 = smov 8  }
 0x458   : > { %2375 = dma.vmem_to_hbm [thread:$0]  (%p3362_p10), %s3287_s25, 256, %s3285_s16, %s3292_s0, %s2734_s29, %s2734_s29, %s2735_s18  }
 0x459 PF: > { %p2392_p11 = scmp.ge.s32.totalorder %s2725_s14, 2  ;;  %s1861_s12 = sand.u32 1, %s2705_s30  }
 0x45a   : > { %p3363_p13 = scmp.ne.s32.totalorder %s3354_s21, 0  ;;  %s1862_s28 = scalar_lea.sflag [#allocation3], %s1861_s12 }
 0x45c   : > { %p2385_p1 = pnand %p2392_p11, %p3363_p13 }
 0x45e   : > { %p2386_p6 = pneg %p2385_p1 }
 0x460   : > { %2700 = dma.done.wait (%p2386_p6), %s1862_s28, 256  }
 0x461   : > { %2702 = vsyncadd (%p2386_p6), %s1862_s28, 4294967040  ;;  %s24_s14 = sadd.s32 1, %s2725_s14   ;;  %s3364_s30 = smov %s2709_s10 }
 0x462   : > { %p21_p7 = scmp.ge.s32.totalorder %s24_s14, 4   ;;  %s3365_s10 = smov %s2713_s11 }
 0x463   : > { %s3366_s11 = smov %s2839_s22  ;;  %s3367_s12 = smov %s2721_s13 }
 0x464   : > { %s3368_s13 = smov %s3370_s17  ;;  %23 = sbr.rel (!%p21_p7) target bundleno = 9 (0x9), region = 114 }
 0x469   :  { %1867 = vsyncpa [#allocation3], 1 }
 0x46a   :  { %1869 = vsyncpa [#allocation3 + $0x1], 1 }
 0x46b   :  { %1870 = vsyncpa [#allocation4], 1 }
 0x46c   :  { %1872 = vsyncpa [#allocation4 + $0x1], 1 }
 0x46d   :  { %1873 = vsyncpa [#allocation6], 1 }

</bundles_post_ra>
